<compile_context>
chip_gen: v6e
topology: v6e:2x2x1
jax: 0.10.0
libtpu: 0.0.40
codegen_flags: <defaults>
</compile_context>

<pallas_src>
import jax
import jax.numpy as jnp
from jax.experimental import pallas as pl
from jax.experimental.pallas import tpu as pltpu


# ----------------------------------------------------------------------------
# Parameters (deterministic init, PyTorch nn.Linear-style U(-1/sqrt(fan_in), .))
# ----------------------------------------------------------------------------
_PARAM_SPECS = [
    # name, shape (out, in) / (out,), fan_in
    ("Wa_obj", (64, 8), 8), ("ba_obj", (64,), 8),      # attention gate 8->64
    ("W1_obj", (16, 64), 64), ("b1_obj", (16,), 64),   # mlp 64->16
    ("W2_obj", (1, 16), 16), ("b2_obj", (1,), 16),     # mlp 16->1
    ("Wr_obj", (1, 64), 64), ("br_obj", (1,), 64),     # residual 64->1
    ("Wa_bin", (64, 8), 8), ("ba_bin", (64,), 8),
    ("W1_bin", (16, 64), 64), ("b1_bin", (16,), 64),
    ("W2_bin", (1, 16), 16), ("b2_bin", (1,), 16),
    ("Wr_bin", (1, 64), 64), ("br_bin", (1,), 64),
]

_WSLAB_ROWS = 216  # 128 (att) + 40 (block-diag mlp|res) + 40 (bias column) + 2 (heads) + pad


def init_params(key):
    params = {}
    keys = jax.random.split(key, len(_PARAM_SPECS))
    for k, (name, shape, fan_in) in zip(keys, _PARAM_SPECS):
        bound = 1.0 / (float(fan_in) ** 0.5)
        params[name] = jax.random.uniform(k, shape, jnp.float32, -bound, bound)
    return params


def pack_params(p):
    """Pack all weights/biases into one 128-lane-wide f32 slab (216, 128).

    Row layout:
      [  0:128, 0: 8]  attention-gate weights (obj rows 0:64, bin rows 64:128)
      [  0:128, 8   ]  attention-gate biases (consumed via constant-1 RHS row)
      [128:168, ... ]  block-diagonal (40,128) mlp|residual weights:
                         rows 0:16 cols 0:64   = W1_obj
                         rows 16:32 cols 64:128 = W1_bin
                         row 32 cols 0:64       = Wr_obj
                         row 33 cols 64:128     = Wr_bin   (rows 34:40 zero)
      [168:208, 0   ]  bias column for the block-diag dot (same row order)
      [208:210, 0:32]  heads: row 0 = [W2_obj | 0], row 1 = [0 | W2_bin]
      [208:210, 32  ]  head biases b2_obj / b2_bin
    """
    w = jnp.zeros((_WSLAB_ROWS, 128), jnp.float32)
    # attention gates
    w = w.at[0:64, 0:8].set(p["Wa_obj"])
    w = w.at[64:128, 0:8].set(p["Wa_bin"])
    w = w.at[0:64, 8].set(p["ba_obj"])
    w = w.at[64:128, 8].set(p["ba_bin"])
    # block-diagonal mlp + residual weights
    w = w.at[128:144, 0:64].set(p["W1_obj"])
    w = w.at[144:160, 64:128].set(p["W1_bin"])
    w = w.at[160, 0:64].set(p["Wr_obj"][0])
    w = w.at[161, 64:128].set(p["Wr_bin"][0])
    # matching bias column (row 168 + k biases output row k of the dot)
    w = w.at[168:184, 0].set(p["b1_obj"])
    w = w.at[184:200, 0].set(p["b1_bin"])
    w = w.at[200, 0].set(p["br_obj"][0])
    w = w.at[201, 0].set(p["br_bin"][0])
    # block-diagonal heads + biases
    w = w.at[208, 0:16].set(p["W2_obj"][0])
    w = w.at[209, 16:32].set(p["W2_bin"][0])
    w = w.at[208, 32].set(p["b2_obj"][0])
    w = w.at[209, 32].set(p["b2_bin"][0])
    return w


# ----------------------------------------------------------------------------
# Kernel helpers (traced inside the Pallas body)
# ----------------------------------------------------------------------------
def _ln_ch(x, eps=1e-5):
    """One-pass LayerNorm over the channel axis (axis 0) of a (C, TM) tile."""
    inv_c = 1.0 / x.shape[0]
    mu = jnp.sum(x, axis=0, keepdims=True) * inv_c
    ex2 = jnp.sum(x * x, axis=0, keepdims=True) * inv_c
    var = jnp.maximum(ex2 - mu * mu, 0.0)
    return (x - mu) * jax.lax.rsqrt(var + eps)


# ----------------------------------------------------------------------------
# Fused per-pixel CollisionNet kernel (channels on sublanes, pixels on lanes)
# ----------------------------------------------------------------------------
def _collision_kernel(rep_ref, qry_ref, w_ref, o_ref, gated_ref):
    f32 = jnp.float32
    bf16 = jnp.bfloat16
    tm = rep_ref.shape[-1]

    rep = rep_ref[...].astype(f32)             # (64, TM) representation channels
    qry = qry_ref[...].astype(f32)             # ( 8, TM) query channels

    f_ln = _ln_ch(rep)                         # LN affine = identity at fresh init
    q_ln = _ln_ch(qry)

    # --- both decoders' attention gates in one dot, bias folded into the MXU
    #     via a constant-1 row: (128,9)@(9,TM) ------------------------------
    q9 = jnp.concatenate([q_ln.astype(bf16), jnp.ones((1, tm), bf16)], axis=0)
    att = jax.nn.sigmoid(
        jnp.dot(w_ref[0:128, 0:9].astype(bf16), q9,
                preferred_element_type=f32))   # (128, TM); rows 0:64 obj, 64:128 bin

    # --- gated features for BOTH decoders in one (128, TM) bf16 scratch ----
    gated_ref[0:64, :] = (f_ln * att[0:64, :]).astype(bf16)
    gated_ref[64:128, :] = (f_ln * att[64:128, :]).astype(bf16)

    # --- one block-diagonal (40,128)@(128,TM) dot: rows 0:16 obj hidden,
    #     16:32 bin hidden, 32/33 obj/bin linear residual -------------------
    z = (jnp.dot(w_ref[128:168, 0:128].astype(bf16), gated_ref[...],
                 preferred_element_type=f32)
         + w_ref[168:208, 0:1])                # (40, TM)

    m = jnp.maximum(z[0:32, :], 0.0).astype(bf16)   # relu'd hidden, both decoders
    res = z[32:34, :]                               # pre-relu residuals (2, TM)

    # --- both 1-wide heads as one block-diagonal dot: (2,32)@(32,TM) -------
    pre = (jnp.dot(w_ref[208:210, 0:32].astype(bf16), m,
                   preferred_element_type=f32)
           + w_ref[208:210, 32:33]
           + res)                              # (2, TM)

    o_ref[...] = jax.nn.sigmoid(pre)           # lane-dense (2, TM) store


def collision_pallas(rep, qry, w_slab, tm_max=4096):
    """rep: (N, 64, HW), qry: (N, 8, HW) (bf16 or f32). Returns (N, 2, HW) f32."""
    n, cr, hw = rep.shape
    _, cq, _ = qry.shape

    # Lane-aligned pixel tile; when N == 1 split the pixel axis so there are
    # still >= 2 grid steps for v7x's two TensorCores.
    tiles_target = 1 if n >= 2 else 2
    tm = min(tm_max, max(128, pl.cdiv(pl.cdiv(hw, tiles_target), 128) * 128))
    hwp = pl.cdiv(hw, tm) * tm
    if hwp != hw:
        pad = ((0, 0), (0, 0), (0, hwp - hw))
        rep = jnp.pad(rep, pad)
        qry = jnp.pad(qry, pad)
    n_tiles = hwp // tm

    in_bytes = rep.dtype.itemsize
    flops_px = 2 * (128 * 9 + 40 * 128 + 2 * 32) + 24 * 72
    cost = pl.CostEstimate(
        flops=int(flops_px * n * hwp),
        transcendentals=int(132 * n * hwp),
        bytes_accessed=int((cr + cq) * in_bytes * n * hwp
                           + 2 * 4 * n * hwp + w_slab.size * 4))

    # ~4 KiB of VMEM per tile pixel covers the double-buffered bf16 inputs,
    # the (128, TM) bf16 scratch and all f32 intermediates with ~2x headroom;
    # capped at 64 MiB so the request never exceeds v7x's per-TC VMEM.
    vmem_limit = min(4 * 1024 * tm + (6 << 20), 64 << 20)

    out = pl.pallas_call(
        _collision_kernel,
        out_shape=jax.ShapeDtypeStruct((n, 2, hwp), jnp.float32),
        grid=(n, n_tiles),
        in_specs=[
            pl.BlockSpec((pl.Squeezed(), cr, tm), lambda b, i: (b, 0, i)),
            pl.BlockSpec((pl.Squeezed(), cq, tm), lambda b, i: (b, 0, i)),
            pl.BlockSpec((_WSLAB_ROWS, 128), lambda b, i: (0, 0)),
        ],
        out_specs=pl.BlockSpec((pl.Squeezed(), 2, tm), lambda b, i: (b, 0, i)),
        scratch_shapes=[pltpu.VMEM((128, tm), jnp.bfloat16)],
        compiler_params=pltpu.CompilerParams(
            dimension_semantics=("parallel", "parallel"),
            vmem_limit_bytes=int(vmem_limit)),
        cost_estimate=cost,
    )(rep, qry, w_slab)
    return out[:, :, :hw]


# ----------------------------------------------------------------------------
# Wrapper: only free reshapes (NCHW -> (N, C, H*W)) plus a one-time bf16 cast.
# If the upstream network already produces bf16, the cast is a no-op.
# ----------------------------------------------------------------------------
@jax.jit
def collision_forward(representation, query, w_slab):
    n, cr, h, w = representation.shape
    cq = query.shape[1]
    hw = h * w
    rep = representation.reshape(n, cr, hw).astype(jnp.bfloat16)
    qry = query.reshape(n, cq, hw).astype(jnp.bfloat16)
    out = collision_pallas(rep, qry, w_slab)          # (N, 2, HW) f32
    return out.reshape(n, 2, h, w)                    # free reshape to NCHW


if __name__ == "__main__":
    key = jax.random.PRNGKey(0)
    kr, kq, kw = jax.random.split(key, 3)

    N, H, W = 2, 16, 16
    representation = jax.random.normal(kr, (N, 64, H, W), jnp.float32)
    query = jax.random.normal(kq, (N, 8, H, W), jnp.float32)       # 7-dof pose + depth

    params = init_params(kw)
    w_slab = pack_params(params)

    out = collision_forward(representation, query, w_slab)
    out = jax.block_until_ready(out)

    assert out.shape == (N, 2, H, W), out.shape
    assert out.dtype == jnp.float32
    assert bool(jnp.all(jnp.isfinite(out)))
    assert bool(jnp.all((out >= 0.0) & (out <= 1.0)))
    print("KERNEL_OK")
</pallas_src>

<mosaic_0001>
module attributes {stable_mosaic.version = 11 : i64} {
  func.func @_collision_kernel(%arg0: i32, %arg1: i32, %arg2: memref<1x64x256xbf16, #tpu.memory_space<vmem>>, %arg3: memref<1x8x256xbf16, #tpu.memory_space<vmem>>, %arg4: memref<216x128xf32, #tpu.memory_space<vmem>>, %arg5: memref<1x2x256xf32, #tpu.memory_space<vmem>>, %arg6: memref<128x256xbf16, #tpu.memory_space<vmem>>) attributes {dimension_semantics = [#tpu.dimension_semantics<parallel>, #tpu.dimension_semantics<parallel>], iteration_bounds = array<i64: 2, 1>, scalar_prefetch = 0 : i64, scratch_operands = 1 : i64, tpu.core_type = #tpu.core_type<tc>, window_params = [{transform_indices = @transform_0, window_bounds = array<i64: 1, 64, 256>}, {transform_indices = @transform_1, window_bounds = array<i64: 1, 8, 256>}, {pipeline_mode = #tpu.pipeline_mode<synchronous>, transform_indices = @transform_2, window_bounds = array<i64: 216, 128>}, {transform_indices = @transform_3, window_bounds = array<i64: 1, 2, 256>}]} {
    %c0 = arith.constant 0 : index
    %c0_0 = arith.constant 0 : index
    %c0_1 = arith.constant 0 : index
    %0 = vector.load %arg2[%c0, %c0_0, %c0_1] : memref<1x64x256xbf16, #tpu.memory_space<vmem>>, vector<1x64x256xbf16>
    %1 = vector.shape_cast %0 : vector<1x64x256xbf16> to vector<64x256xbf16>
    %2 = arith.extf %1 : vector<64x256xbf16> to vector<64x256xf32>
    %c0_2 = arith.constant 0 : index
    %c0_3 = arith.constant 0 : index
    %c0_4 = arith.constant 0 : index
    %3 = vector.load %arg3[%c0_2, %c0_3, %c0_4] : memref<1x8x256xbf16, #tpu.memory_space<vmem>>, vector<1x8x256xbf16>
    %4 = vector.shape_cast %3 : vector<1x8x256xbf16> to vector<8x256xbf16>
    %5 = arith.extf %4 : vector<8x256xbf16> to vector<8x256xf32>
    %cst = arith.constant dense<0.000000e+00> : vector<256xf32>
    %6 = vector.multi_reduction <add>, %2, %cst [0] : vector<64x256xf32> to vector<256xf32>
    %7 = vector.shape_cast %6 : vector<256xf32> to vector<1x256xf32>
    %cst_5 = arith.constant 1.562500e-02 : f32
    %8 = vector.broadcast %cst_5 : f32 to vector<1x256xf32>
    %9 = arith.mulf %7, %8 : vector<1x256xf32>
    %10 = arith.mulf %2, %2 : vector<64x256xf32>
    %cst_6 = arith.constant dense<0.000000e+00> : vector<256xf32>
    %11 = vector.multi_reduction <add>, %10, %cst_6 [0] : vector<64x256xf32> to vector<256xf32>
    %12 = vector.shape_cast %11 : vector<256xf32> to vector<1x256xf32>
    %cst_7 = arith.constant 1.562500e-02 : f32
    %13 = vector.broadcast %cst_7 : f32 to vector<1x256xf32>
    %14 = arith.mulf %12, %13 : vector<1x256xf32>
    %15 = arith.mulf %9, %9 : vector<1x256xf32>
    %16 = arith.subf %14, %15 : vector<1x256xf32>
    %cst_8 = arith.constant 0.000000e+00 : f32
    %17 = vector.broadcast %cst_8 : f32 to vector<1x256xf32>
    %18 = arith.maximumf %16, %17 : vector<1x256xf32>
    %19 = vector.broadcast %9 : vector<1x256xf32> to vector<64x256xf32>
    %20 = arith.subf %2, %19 : vector<64x256xf32>
    %cst_9 = arith.constant 9.99999974E-6 : f32
    %21 = vector.broadcast %cst_9 : f32 to vector<1x256xf32>
    %22 = arith.addf %18, %21 : vector<1x256xf32>
    %23 = math.rsqrt %22 : vector<1x256xf32>
    %24 = vector.broadcast %23 : vector<1x256xf32> to vector<64x256xf32>
    %25 = arith.mulf %20, %24 : vector<64x256xf32>
    %cst_10 = arith.constant dense<0.000000e+00> : vector<256xf32>
    %26 = vector.multi_reduction <add>, %5, %cst_10 [0] : vector<8x256xf32> to vector<256xf32>
    %27 = vector.shape_cast %26 : vector<256xf32> to vector<1x256xf32>
    %cst_11 = arith.constant 1.250000e-01 : f32
    %28 = vector.broadcast %cst_11 : f32 to vector<1x256xf32>
    %29 = arith.mulf %27, %28 : vector<1x256xf32>
    %30 = arith.mulf %5, %5 : vector<8x256xf32>
    %cst_12 = arith.constant dense<0.000000e+00> : vector<256xf32>
    %31 = vector.multi_reduction <add>, %30, %cst_12 [0] : vector<8x256xf32> to vector<256xf32>
    %32 = vector.shape_cast %31 : vector<256xf32> to vector<1x256xf32>
    %cst_13 = arith.constant 1.250000e-01 : f32
    %33 = vector.broadcast %cst_13 : f32 to vector<1x256xf32>
    %34 = arith.mulf %32, %33 : vector<1x256xf32>
    %35 = arith.mulf %29, %29 : vector<1x256xf32>
    %36 = arith.subf %34, %35 : vector<1x256xf32>
    %cst_14 = arith.constant 0.000000e+00 : f32
    %37 = vector.broadcast %cst_14 : f32 to vector<1x256xf32>
    %38 = arith.maximumf %36, %37 : vector<1x256xf32>
    %39 = vector.broadcast %29 : vector<1x256xf32> to vector<8x256xf32>
    %40 = arith.subf %5, %39 : vector<8x256xf32>
    %cst_15 = arith.constant 9.99999974E-6 : f32
    %41 = vector.broadcast %cst_15 : f32 to vector<1x256xf32>
    %42 = arith.addf %38, %41 : vector<1x256xf32>
    %43 = math.rsqrt %42 : vector<1x256xf32>
    %44 = vector.broadcast %43 : vector<1x256xf32> to vector<8x256xf32>
    %45 = arith.mulf %40, %44 : vector<8x256xf32>
    %46 = arith.truncf %45 : vector<8x256xf32> to vector<8x256xbf16>
    %cst_16 = arith.constant 1.000000e+00 : bf16
    %47 = vector.broadcast %cst_16 : bf16 to vector<1x256xbf16>
    %48 = tpu.concatenate %46, %47 in 0 : vector<8x256xbf16>, vector<1x256xbf16> -> vector<9x256xbf16>
    %c0_17 = arith.constant 0 : index
    %c0_18 = arith.constant 0 : index
    %49 = vector.load %arg4[%c0_17, %c0_18] : memref<216x128xf32, #tpu.memory_space<vmem>>, vector<128x9xf32>
    %50 = arith.truncf %49 : vector<128x9xf32> to vector<128x9xbf16>
    %cst_19 = arith.constant dense<0.000000e+00> : vector<128x256xf32>
    %51 = tpu.matmul %50, %48, %cst_19 {dimension_numbers = #tpu.dot_dimension_numbers<[1], [0], [0], [1], [0, 0, 1, 1], [], []>} : vector<128x9xbf16>, vector<9x256xbf16>, vector<128x256xf32> -> vector<128x256xf32>
    %52 = arith.negf %51 : vector<128x256xf32>
    %53 = math.exp %52 : vector<128x256xf32>
    %cst_20 = arith.constant 1.000000e+00 : f32
    %54 = vector.broadcast %cst_20 : f32 to vector<128x256xf32>
    %55 = arith.addf %54, %53 : vector<128x256xf32>
    %56 = arith.divf %54, %55 : vector<128x256xf32>
    %57 = vector.extract_strided_slice %56 {offsets = [0, 0], sizes = [64, 256], strides = [1, 1]} : vector<128x256xf32> to vector<64x256xf32>
    %58 = arith.mulf %25, %57 : vector<64x256xf32>
    %59 = arith.truncf %58 : vector<64x256xf32> to vector<64x256xbf16>
    %c0_21 = arith.constant 0 : index
    %c0_22 = arith.constant 0 : index
    %60 = vector.load %arg6[%c0_21, %c0_22] : memref<128x256xbf16, #tpu.memory_space<vmem>>, vector<64x256xbf16>
    tpu.vector_store %arg6[%c0_21, %c0_22], %59 {strides = array<i32>} : memref<128x256xbf16, #tpu.memory_space<vmem>>, vector<64x256xbf16>,
    %61 = vector.extract_strided_slice %56 {offsets = [64, 0], sizes = [64, 256], strides = [1, 1]} : vector<128x256xf32> to vector<64x256xf32>
    %62 = arith.mulf %25, %61 : vector<64x256xf32>
    %63 = arith.truncf %62 : vector<64x256xf32> to vector<64x256xbf16>
    %c64 = arith.constant 64 : index
    %c0_23 = arith.constant 0 : index
    %64 = vector.load %arg6[%c64, %c0_23] : memref<128x256xbf16, #tpu.memory_space<vmem>>, vector<64x256xbf16>
    tpu.vector_store %arg6[%c64, %c0_23], %63 {strides = array<i32>} : memref<128x256xbf16, #tpu.memory_space<vmem>>, vector<64x256xbf16>,
    %c128 = arith.constant 128 : index
    %c0_24 = arith.constant 0 : index
    %65 = vector.load %arg4[%c128, %c0_24] : memref<216x128xf32, #tpu.memory_space<vmem>>, vector<40x128xf32>
    %66 = arith.truncf %65 : vector<40x128xf32> to vector<40x128xbf16>
    %c0_25 = arith.constant 0 : index
    %c0_26 = arith.constant 0 : index
    %67 = vector.load %arg6[%c0_25, %c0_26] : memref<128x256xbf16, #tpu.memory_space<vmem>>, vector<128x256xbf16>
    %cst_27 = arith.constant dense<0.000000e+00> : vector<40x256xf32>
    %68 = tpu.matmul %66, %67, %cst_27 {dimension_numbers = #tpu.dot_dimension_numbers<[1], [0], [0], [1], [0, 0, 1, 1], [], []>} : vector<40x128xbf16>, vector<128x256xbf16>, vector<40x256xf32> -> vector<40x256xf32>
    %c168 = arith.constant 168 : index
    %c0_28 = arith.constant 0 : index
    %69 = vector.load %arg4[%c168, %c0_28] : memref<216x128xf32, #tpu.memory_space<vmem>>, vector<40x1xf32>
    %70 = vector.broadcast %69 : vector<40x1xf32> to vector<40x256xf32>
    %71 = arith.addf %68, %70 : vector<40x256xf32>
    %72 = vector.extract_strided_slice %71 {offsets = [0, 0], sizes = [32, 256], strides = [1, 1]} : vector<40x256xf32> to vector<32x256xf32>
    %cst_29 = arith.constant 0.000000e+00 : f32
    %73 = vector.broadcast %cst_29 : f32 to vector<32x256xf32>
    %74 = arith.maximumf %72, %73 : vector<32x256xf32>
    %75 = arith.truncf %74 : vector<32x256xf32> to vector<32x256xbf16>
    %76 = vector.extract_strided_slice %71 {offsets = [32, 0], sizes = [2, 256], strides = [1, 1]} : vector<40x256xf32> to vector<2x256xf32>
    %c208 = arith.constant 208 : index
    %c0_30 = arith.constant 0 : index
    %77 = vector.load %arg4[%c208, %c0_30] : memref<216x128xf32, #tpu.memory_space<vmem>>, vector<2x32xf32>
    %78 = arith.truncf %77 : vector<2x32xf32> to vector<2x32xbf16>
    %cst_31 = arith.constant dense<0.000000e+00> : vector<2x256xf32>
    %79 = tpu.matmul %78, %75, %cst_31 {dimension_numbers = #tpu.dot_dimension_numbers<[1], [0], [0], [1], [0, 0, 1, 1], [], []>} : vector<2x32xbf16>, vector<32x256xbf16>, vector<2x256xf32> -> vector<2x256xf32>
    %c208_32 = arith.constant 208 : index
    %c32 = arith.constant 32 : index
    %80 = vector.load %arg4[%c208_32, %c32] : memref<216x128xf32, #tpu.memory_space<vmem>>, vector<2x1xf32>
    %81 = vector.broadcast %80 : vector<2x1xf32> to vector<2x256xf32>
    %82 = arith.addf %79, %81 : vector<2x256xf32>
    %83 = arith.addf %82, %76 : vector<2x256xf32>
    %84 = arith.negf %83 : vector<2x256xf32>
    %85 = math.exp %84 : vector<2x256xf32>
    %cst_33 = arith.constant 1.000000e+00 : f32
    %86 = vector.broadcast %cst_33 : f32 to vector<2x256xf32>
    %87 = arith.addf %86, %85 : vector<2x256xf32>
    %88 = arith.divf %86, %87 : vector<2x256xf32>
    %c0_34 = arith.constant 0 : index
    %c0_35 = arith.constant 0 : index
    %c0_36 = arith.constant 0 : index
    %89 = vector.load %arg5[%c0_34, %c0_35, %c0_36] : memref<1x2x256xf32, #tpu.memory_space<vmem>>, vector<1x2x256xf32>
    %90 = vector.shape_cast %89 : vector<1x2x256xf32> to vector<2x256xf32>
    %91 = vector.shape_cast %88 : vector<2x256xf32> to vector<1x2x256xf32>
    tpu.vector_store %arg5[%c0_34, %c0_35, %c0_36], %91 {strides = array<i32>} : memref<1x2x256xf32, #tpu.memory_space<vmem>>, vector<1x2x256xf32>,
    return
  }
  func.func @transform_0(%arg0: i32, %arg1: i32) -> (i32, i32, i32) {
    %c0_i32 = arith.constant 0 : i32
    %c0_i32_0 = arith.constant 0 : i32
    return %arg0, %c0_i32, %arg1 : i32, i32, i32
  }
  func.func @transform_1(%arg0: i32, %arg1: i32) -> (i32, i32, i32) {
    %c0_i32 = arith.constant 0 : i32
    %c0_i32_0 = arith.constant 0 : i32
    return %arg0, %c0_i32, %arg1 : i32, i32, i32
  }
  func.func @transform_2(%arg0: i32, %arg1: i32) -> (i32, i32) {
    %c0_i32 = arith.constant 0 : i32
    %c0_i32_0 = arith.constant 0 : i32
    %c0_i32_1 = arith.constant 0 : i32
    return %c0_i32, %c0_i32_0 : i32, i32
  }
  func.func @transform_3(%arg0: i32, %arg1: i32) -> (i32, i32, i32) {
    %c0_i32 = arith.constant 0 : i32
    %c0_i32_0 = arith.constant 0 : i32
    return %arg0, %c0_i32, %arg1 : i32, i32, i32
  }
}

</mosaic_0001>

<bundles_post_ra>
// kernel: collision_forward.1
= control target key start
LH: loop header
LB: loop body
LE: loop exit
PB: predicated region body
PF: predicated region fallthrough
CT: control target
= control target key end

     0   :  { %s1707_s12 = smov 0   ;;  %s1709_s13 = smov 0   ;;  %s2146_s0 = inlined_call_operand.vmem [shape: bf16[2,64,256], index: 0, kind: input, shape index: {}]   ;;  %s2147_s1 = inlined_call_operand.vmem [shape: bf16[2,8,256], index: 1, kind: input, shape index: {}]   ;;  %s2148_s2 = inlined_call_operand.vmem [shape: f32[216,128], index: 2, kind: input, shape index: {}]   ;;  %s2149_s3 = inlined_call_operand.vmem [shape: f32[2,2,256], index: 3, kind: output, shape index: {}]  }
   0x1   :  { %s1711_s14 = smov 0  }
   0x2 LB: > { %s25_s15 = sadd.s32 1, %s1677_s13  ;;  %p1340_p0 = scmp.ge.s32.totalorder %s1681_s14, 1  ;;  %s1681_s14 = sphi %s1711_s14, %s13_s14   ;;  %s1677_s13 = sphi %s1709_s13, %s2158_s13   ;;  %s1673_s12 = sphi %s1707_s12, %s2157_s12  }
   0x3   : > { %p27_p1 = scmp.ge.s32.totalorder %s25_s15, 2  ;;  %p175_p2 = scmp.lt.s32.totalorder %s1681_s14, 3 }
   0x5   : > { %s2160_s15 = smov (%p27_p1, %s25_s15), 0  ;;  %p176_p3 = pnand %p1340_p0, %p175_p2 }
   0x6   : > { %p217_p4 = scmp.lt.s32.totalorder (!%p176_p3), %s1673_s12, 1 }
   0x7   : > { %179 = sbr.rel (%p176_p3) target bundleno = 843 (0x34b), region = 32 }
   0xc   : > { %v2150_v0 = vmov 0   ;;  %s2162_s12 = smov (!%p217_p4, %s1673_s12), 1  ;;  %vm435_vm0 = vcmask 1043456   ;;  %vm490_vm1 = vcmask 1044480   ;;  %v1684_v45 = vmov 65535   ;;  %v441_v54 = vld [vmem:[%s2148_s2] sm:$0xff] }
   0xd   : > { %529 = vmatprep.mubr.bf16.mxu0 %v2150_v0  ;;  %1112 = vmatprep.mubr.bf16.mxu1 %v2150_v0  ;;  %s1426_s16 = sshll.u32 %s2162_s12, 3  ;;  %v491_v46 = vsel %vm435_vm0, 4294967295, %v1684_v45  ;;  %v442_v55 = vld [vmem:[%s2148_s2 + $0x8] sm:$0xff]  ;;  %vm465_vm2 = vcmask 72704   ;;  %v443_v60 = vld [vmem:[%s2148_s2 + $0x10] sm:$0xff]  ;;  %v444_v61 = vld [vmem:[%s2148_s2 + $0x18] sm:$0xff] }
   0xe   : > { %1488 = vset.pattern.permute.xlu1 %v2150_v0  ;;  %1487 = vset.pattern.permute.xlu0 %v2150_v0  ;;  %s234_s19 = scalar_lea.vmem %s2147_s1, %s1426_s16  ;;  %v492_v51 = vsel %vm490_vm1, %v491_v46, 0  ;;  %v457_v59 = vpack.c.bf16 %v442_v55, %v441_v54  ;;  %v458_v62 = vpack.c.bf16 %v444_v61, %v443_v60  ;;  %v445_v63 = vld [vmem:[%s2148_s2 + $0x20] sm:$0xff]  ;;  %s1425_s29 = sshll.u32 %s2162_s12, 6  ;;  %v1685_v61 = vmov 1935823168  }
   0xf   : > { %v272_v1 = vld [vmem:[%s234_s19] sm:$0xff]  ;;  %s1805_s5 = scalar_lea.vmem %s2146_s0, %s1425_s29  ;;  %vm1160_vm3 = vcmask 261120  }
  0x10   : > { %v274_v2 = vunpack.c.h.bf16 %v272_v1  ;;  %v273_v3 = vunpack.c.l.bf16 %v272_v1  ;;  %v446_v1 = vld [vmem:[%s2148_s2 + $0x28] sm:$0xff] }
  0x12   : > { %v395_v4 = vrot.slane %v274_v2, 4  ;;  %v404_v5 = vmul.f32 %v274_v2, %v274_v2  ;;  %v389_v6 = vrot.slane %v273_v3, 4  ;;  %v403_v7 = vmul.f32 %v273_v3, %v273_v3 }
  0x14   : > { %v396_v8 = vadd.f32 %v395_v4, %v274_v2  ;;  %v411_v9 = vrot.slane %v404_v5, 4  ;;  %v390_v10 = vadd.f32 %v389_v6, %v273_v3  ;;  %v405_v11 = vrot.slane %v403_v7, 4  ;;  %v448_v4 = vld [vmem:[%s2148_s2 + $0x38] sm:$0xff]  ;;  %v449_v6 = vld [vmem:[%s2148_s2 + $0x40] sm:$0xff] }
  0x16   : > { %v397_v12 = vrot.slane %v396_v8, 2  ;;  %v412_v13 = vadd.f32 %v411_v9, %v404_v5  ;;  %v391_v14 = vrot.slane %v390_v10, 2  ;;  %v406_v15 = vadd.f32 %v405_v11, %v403_v7  ;;  %v450_v7 = vld [vmem:[%s2148_s2 + $0x48] sm:$0xff]  ;;  %v451_v9 = vld [vmem:[%s2148_s2 + $0x50] sm:$0xff] }
  0x18   : > { %v398_v16 = vadd.f32 %v397_v12, %v396_v8  ;;  %v413_v17 = vrot.slane %v412_v13, 2  ;;  %v392_v18 = vadd.f32 %v391_v14, %v390_v10  ;;  %v407_v19 = vrot.slane %v406_v15, 2  ;;  %v452_v10 = vld [vmem:[%s2148_s2 + $0x58] sm:$0xff]  ;;  %v453_v12 = vld [vmem:[%s2148_s2 + $0x60] sm:$0xff] }
  0x19   : > { %v461_v8 = vpack.c.bf16 %v450_v7, %v449_v6  ;;  %v462_v11 = vpack.c.bf16 %v452_v10, %v451_v9 }
  0x1a   : > { %v399_v20 = vrot.slane %v398_v16, 1  ;;  %v414_v21 = vadd.f32 %v413_v17, %v412_v13  ;;  %v393_v22 = vrot.slane %v392_v18, 1  ;;  %v408_v23 = vadd.f32 %v407_v19, %v406_v15  ;;  %v454_v13 = vld [vmem:[%s2148_s2 + $0x68] sm:$0xff]  ;;  %v455_v15 = vld [vmem:[%s2148_s2 + $0x70] sm:$0xff] }
  0x1b   : > { %v463_v14 = vpack.c.bf16 %v454_v13, %v453_v12  ;;  %v1811_v19 = vld [vmem:[%s1805_s5 + $0x8] sm:$0xff] }
  0x1c   : > { %v400_v24 = vadd.f32 %v399_v20, %v398_v16  ;;  %v415_v25 = vrot.slane %v414_v21, 1  ;;  %v394_v26 = vadd.f32 %v393_v22, %v392_v18  ;;  %v409_v27 = vrot.slane %v408_v23, 1  ;;  %v456_v16 = vld [vmem:[%s2148_s2 + $0x78] sm:$0xff]  ;;  %v1808_v18 = vld [vmem:[%s1805_s5] sm:$0xff]  ;;  %v1816_v22 = vld [vmem:[%s1805_s5 + $0x10] sm:$0xff] }
  0x1d   : > { %v464_v17 = vpack.c.bf16 %v456_v16, %v455_v15  ;;  %v256_v20 = vunpack.c.l.bf16 %v1808_v18  ;;  %1647 = vmul.bf16.f32.vacc0 %v1808_v18, %v1808_v18 }
  0x1e   : > { %v402_v28 = vmul.f32 0.125, %v400_v24  ;;  %v416_v29 = vadd.f32 %v415_v25, %v414_v21  ;;  %v401_v30 = vmul.f32 0.125, %v394_v26  ;;  %v410_v31 = vadd.f32 %v409_v27, %v408_v23  ;;  %v1826_v27 = vld [vmem:[%s1805_s5 + $0x18] sm:$0xff] }
  0x1f   : > { %v258_v21 = vunpack.c.l.bf16 %v1811_v19  ;;  %v257_v23 = vunpack.c.h.bf16 %v1808_v18  ;;  %v259_v24 = vunpack.c.h.bf16 %v1811_v19  ;;  %v260_v25 = vunpack.c.l.bf16 %v1816_v22 }
  0x20   : > { %v418_v32 = vmul.f32 0.125, %v416_v29  ;;  %v420_v33 = vmul.f32 %v402_v28, %v402_v28  ;;  %v417_v34 = vmul.f32 0.125, %v410_v31  ;;  %v419_v35 = vmul.f32 %v401_v30, %v401_v30 }
  0x21   : > { %v426_v42 = vsub.f32 %v274_v2, %v402_v28  ;;  %v425_v43 = vsub.f32 %v273_v3, %v401_v30  ;;  %v459_v2 = vpack.c.bf16 %v446_v1, %v445_v63  ;;  %v447_v3 = vld [vmem:[%s2148_s2 + $0x30] sm:$0xff]  ;;  %v275_v26 = vadd.f32 %v258_v21, %v256_v20 }
  0x22   : > { %v422_v36 = vsub.f32 %v418_v32, %v420_v33  ;;  %v421_v37 = vsub.f32 %v417_v34, %v419_v35  ;;  %v460_v5 = vpack.c.bf16 %v448_v4, %v447_v3  ;;  %v261_v28 = vunpack.c.h.bf16 %v1816_v22  ;;  %v1841_v32 = vld [vmem:[%s1805_s5 + $0x20] sm:$0xff] }
  0x23   : > { %v288_v29 = vadd.f32 %v259_v24, %v257_v23  ;;  %v262_v30 = vunpack.c.l.bf16 %v1826_v27  ;;  %v276_v31 = vadd.f32 %v275_v26, %v260_v25  ;;  %1648 = vmac.bf16.f32.vacc0 %v1811_v19, %v1811_v19 }
  0x24   : > { %v424_v38 = vmax.f32 %v422_v36, 0.0  ;;  %v423_v39 = vmax.f32 %v421_v37, 0.0  ;;  %v263_v33 = vunpack.c.h.bf16 %v1826_v27  ;;  %v264_v35 = vunpack.c.l.bf16 %v1841_v32  ;;  %v1852_v37 = vld [vmem:[%s1805_s5 + $0x28] sm:$0xff] }
  0x25   : > { %v289_v34 = vadd.f32 %v288_v29, %v261_v28  ;;  %v277_v36 = vadd.f32 %v276_v31, %v262_v30  ;;  %1649 = vmac.bf16.f32.vacc0 %v1816_v22, %v1816_v22  ;;  %v1661_v1 = vlaneseq }
  0x26   : > { %v428_v40 = vadd.f32 1e-05, %v424_v38  ;;  %v427_v41 = vadd.f32 1e-05, %v423_v39  ;;  %v265_v38 = vunpack.c.h.bf16 %v1841_v32  ;;  %1650 = vmac.bf16.f32.vacc0 %v1826_v27, %v1826_v27 }
  0x27   : > { %v290_v39 = vadd.f32 %v289_v34, %v263_v33  ;;  %1651 = vmac.bf16.f32.vacc0 %v1841_v32, %v1841_v32 }
  0x28   : > { %1491 = vrsqrt.f32 %v428_v40  ;;  %v266_v40 = vunpack.c.l.bf16 %v1852_v37  ;;  %1652 = vmac.bf16.f32.vacc0 %v1852_v37, %v1852_v37 }
  0x29   : > { %1493 = vrsqrt.f32 %v427_v41  ;;  %v278_v41 = vadd.f32 %v277_v36, %v264_v35 }
  0x2b   : > { %v279_v46 = vadd.f32 %v278_v41, %v266_v40 }
  0x35   : > { %v1492_v44 = vpop.eup %1491 }
  0x36   : > { %v1494_v47 = vpop.eup %1493  ;;  %v432_v48 = vmul.f32 %v1492_v44, %v426_v42  ;;  %v1863_v42 = vld [vmem:[%s1805_s5 + $0x30] sm:$0xff]  ;;  %v291_v44 = vadd.f32 %v290_v39, %v265_v38 }
  0x37   : > { %v431_v49 = vmul.f32 %v1494_v47, %v425_v43  ;;  %v267_v43 = vunpack.c.h.bf16 %v1852_v37  ;;  %v268_v45 = vunpack.c.l.bf16 %v1863_v42  ;;  %v1874_v47 = vld [vmem:[%s1805_s5 + $0x38] sm:$0xff]  ;;  %1653 = vmac.bf16.f32.vacc0 %v1863_v42, %v1863_v42  ;;  %s1427_s5 = sshll.u32 %s2162_s12, 2 }
  0x38   : > { %v434_v50 = vpack.c.bf16 %v432_v48, %v432_v48  ;;  %v269_v48 = vunpack.c.h.bf16 %v1863_v42  ;;  %1654 = vmac.bf16.f32.vacc0 %v1874_v47, %v1874_v47  ;;  %s244_s8 = scalar_lea.vmem %s2149_s3, %s1427_s5 }
  0x39   : > { %v433_v52 = vpack.c.bf16 %v431_v49, %v431_v49  ;;  %v292_v49 = vadd.f32 %v291_v44, %v267_v43 }
  0x3a   : > { %v440_v53 = vsel %vm435_vm0, %v434_v50, 1065369472  ;;  %v270_v50 = vunpack.c.l.bf16 %v1874_v47 }
  0x3b   : > { %v495_v56 = vand.u32 %v492_v51, %v440_v53  ;;  %v438_v57 = vsel %vm435_vm0, %v433_v52, 1065369472  ;;  %v271_v52 = vunpack.c.h.bf16 %v1874_v47  ;;  %v293_v53 = vadd.f32 %v292_v49, %v269_v48 }
  0x3c   : > { %v493_v58 = vand.u32 %v492_v51, %v438_v57  ;;  %v280_v51 = vadd.f32 %v279_v46, %v268_v45  ;;  %v1655_v57 = vmovacc.add.low.vacc0 }
  0x3d   : > { %511 = vmatprep.subr.bf16.mxu0 %v495_v56  ;;  %v294_v55 = vadd.f32 %v293_v53, %v271_v52 }
  0x3e   : > { %512 = vmatpush1.bf16.msra.mxu0 %v493_v58  ;;  %v281_v54 = vadd.f32 %v280_v51, %v270_v50  ;;  %v1656_v58 = vmovacc.add.high.vacc0 }
  0x3f   : > { %v295_v6 = vrot.slane %v294_v55, 4 }
  0x40   : > { %v282_v56 = vrot.slane %v281_v54, 4  ;;  %v1658_v60 = vcombine.high %v1655_v57, %v1656_v58 }
  0x41   : > { %1347 = vmatmul.mubr.msk.bf16.vlgmr.msra.gmra.mxu0 %vm465_vm2, %v457_v59  ;;  %v1657_v59 = vcombine.low %v1655_v57, %v1656_v58  ;;  %v296_v9 = vadd.f32 %v295_v6, %v294_v55 }
  0x42   : > { %539 = vmatprep.mubr.bf16.mxu0 %v2150_v0  ;;  %v283_v7 = vadd.f32 %v282_v56, %v281_v54 }
  0x43   : > { %v297_v13 = vrot.slane %v296_v9, 2 }
  0x49   : > { %1348 = vmatmul.mubr.msk.bf16.gmra.mxu0 %vm465_vm2, %v458_v62  ;;  %v1659_v62 = vunpack.c.l.s4 %v1685_v61 }
  0x4a   : > { %549 = vmatprep.mubr.bf16.mxu0 %v2150_v0 }
  0x4b   : > { %v1660_v63 = vunpack.c.0.s8 %v1659_v62 }
  0x51   : > { %1349 = vmatmul.mubr.msk.bf16.gmra.mxu0 %vm465_vm2, %v459_v2  ;;  %v1662_v2 = vshrl.u32 %v1661_v1, 7 }
  0x52   : > { %559 = vmatprep.mubr.bf16.mxu0 %v2150_v0 }
  0x53   : > { %v1663_v3 = vsub.s32 %v1660_v63, %v1662_v2 }
  0x55   : > { %v1664_v4 = vrot.slane %v1657_v59, %v1663_v3 }
  0x59   : > { %1350 = vmatmul.mubr.msk.bf16.gmra.mxu0 %vm465_vm2, %v460_v5  ;;  %v1670_v5 = vrot.slane %v1658_v60, %v1663_v3 }
  0x5a   : > { %569 = vmatprep.mubr.bf16.mxu0 %v2150_v0 }
  0x5b   : > { %v339_v10 = vrot.slane %v1670_v5, 4 }
  0x61   : > { %1351 = vmatmul.mubr.msk.bf16.gmra.mxu0 %vm465_vm2, %v461_v8  ;;  %v326_v8 = vrot.slane %v1664_v4, 4 }
  0x62   : > { %579 = vmatprep.mubr.bf16.mxu0 %v2150_v0 }
  0x63   : > { %v327_v12 = vadd.f32 %v1664_v4, %v326_v8 }
  0x65   : > { %v328_v16 = vrot.slane %v327_v12, 2 }
  0x67   : > { %v329_v31 = vadd.f32 %v328_v16, %v327_v12 }
  0x69   : > { %1352 = vmatmul.mubr.msk.bf16.gmra.mxu0 %vm465_vm2, %v462_v11  ;;  %v284_v11 = vrot.slane %v283_v7, 2  ;;  %v330_v41 = vrot.slane %v329_v31, 1 }
  0x6a   : > { %589 = vmatprep.mubr.bf16.mxu0 %v2150_v0 }
  0x6b   : > { %v285_v15 = vadd.f32 %v284_v11, %v283_v7  ;;  %v331_v51 = vadd.f32 %v330_v41, %v329_v31 }
  0x6d   : > { %v286_v29 = vrot.slane %v285_v15, 1  ;;  %v345_v55 = vmul.f32 0.015625, %v331_v51  ;;  %v970_v51 = vld [vmem:[%s2148_s2 + $0xa8] sm:$0xff] }
  0x6e   : > { %977 = vperm.xlu1 %1488, %v970_v51  }
  0x6f   : > { %v287_v39 = vadd.f32 %v286_v29, %v285_v15 }
  0x71   : > { %1353 = vmatmul.mubr.msk.bf16.gmra.mxu0 %vm465_vm2, %v463_v14  ;;  %v340_v14 = vadd.f32 %v1670_v5, %v339_v10  ;;  %v1895_v49 = vmul.f32 0.015625, %v287_v39 }
  0x72   : > { %599 = vmatprep.mubr.bf16.mxu0 %v2150_v0 }
  0x73   : > { %v341_v26 = vrot.slane %v340_v14, 2  ;;  %v347_v56 = vmul.f32 %v1895_v49, %v1895_v49 }
  0x75   : > { %v342_v36 = vadd.f32 %v341_v26, %v340_v14  ;;  %v349_v60 = vsub.f32 %v345_v55, %v347_v56 }
  0x77   : > { %v343_v46 = vrot.slane %v342_v36, 1  ;;  %v351_v3 = vmax.f32 %v349_v60, 0.0  ;;  %v973_v60 = vld [vmem:[%s2148_s2 + $0xc0] sm:$0xff] }
  0x79   : > { %1354 = vmatmul.mubr.msk.bf16.gmra.mxu0 %vm465_vm2, %v464_v17  ;;  %v298_v17 = vadd.f32 %v297_v13, %v296_v9  ;;  %v344_v54 = vadd.f32 %v343_v46, %v342_v36  ;;  %v369_v9 = vadd.f32 1e-05, %v351_v3  ;;  %v353_v3 = vsub.f32 %v256_v20, %v1895_v49 }
  0x7b   : > { %v299_v34 = vrot.slane %v298_v17, 1  ;;  %v346_v57 = vmul.f32 0.015625, %v344_v54  ;;  %v972_v54 = vld [vmem:[%s2148_s2 + $0xb8] sm:$0xff] }
  0x7c   : > { %987 = vperm.xlu0 %1487, %v972_v54  }
  0x7d   : > { %v300_v44 = vadd.f32 %v299_v34, %v298_v17 }
  0x7f   : > { %v1897_v53 = vmul.f32 0.015625, %v300_v44 }
  0x80   : > { %992 = vperm.xlu0 %1487, %v973_v60  }
  0x81   : > { %v348_v58 = vmul.f32 %v1897_v53, %v1897_v53  ;;  %v356_v18 = vsub.f32 %v259_v24, %v1897_v53  ;;  %v360_v60 = vsub.f32 %v263_v33, %v1897_v53  ;;  %v362_v37 = vsub.f32 %v265_v38, %v1897_v53 }
  0x83   : > { %v350_v63 = vsub.f32 %v346_v57, %v348_v58 }
  0x85   : > { %v352_v6 = vmax.f32 %v350_v63, 0.0 }
  0x87   : > { %v370_v12 = vadd.f32 1e-05, %v352_v6  ;;  %v974_v6 = vld [vmem:[%s2148_s2 + $0xc8] sm:$0xff] }
  0x88   : > { %997 = vperm.xlu0 %1487, %v974_v6  }
 0x101   : > { %v531_v59 = vpop.f32.mrf.mxu0 }
 0x102   : > { %v1355_v61 = vmul.f32 -1.442695, %v531_v59  ;;  %v971_v59 = vld [vmem:[%s2148_s2 + $0xb0] sm:$0xff] }
 0x103   : > { %v533_v62 = vpop.f32.mrf.mxu0  ;;  %982 = vperm.xlu1 %1488, %v971_v59  }
 0x104   : > { %1495 = vpow2.f32 %v1355_v61  ;;  %v1356_v1 = vmul.f32 -1.442695, %v533_v62 }
 0x105   : > { %v535_v2 = vpop.f32.mrf.mxu0 }
 0x106   : > { %1497 = vpow2.f32 %v1356_v1  ;;  %v1357_v4 = vmul.f32 -1.442695, %v535_v2 }
 0x107   : > { %v537_v5 = vpop.f32.mrf.mxu0 }
 0x108   : > { %1499 = vpow2.f32 %v1357_v4  ;;  %v1358_v7 = vmul.f32 -1.442695, %v537_v5 }
 0x109   : > { %v541_v8 = vpop.f32.mrf.mxu0 }
 0x10a   : > { %1501 = vpow2.f32 %v1358_v7  ;;  %v1359_v10 = vmul.f32 -1.442695, %v541_v8 }
 0x10b   : > { %v543_v11 = vpop.f32.mrf.mxu0 }
 0x10c   : > { %1503 = vpow2.f32 %v1359_v10  ;;  %v1360_v13 = vmul.f32 -1.442695, %v543_v11 }
 0x10d   : > { %v545_v14 = vpop.f32.mrf.mxu0  ;;  %1505 = vrsqrt.f32 %v369_v9  ;;  %v354_v9 = vsub.f32 %v257_v23, %v1897_v53 }
 0x10e   : > { %1507 = vpow2.f32 %v1360_v13  ;;  %v1361_v15 = vmul.f32 -1.442695, %v545_v14 }
 0x10f   : > { %v547_v16 = vpop.f32.mrf.mxu0  ;;  %1509 = vrsqrt.f32 %v370_v12  ;;  %v355_v12 = vsub.f32 %v258_v21, %v1895_v49 }
 0x110   : > { %1511 = vpow2.f32 %v1361_v15  ;;  %v1362_v17 = vmul.f32 -1.442695, %v547_v16 }
 0x111   : > { %v1496_v26 = vpop.eup %1495  ;;  %v551_v29 = vpop.f32.mrf.mxu0 }
 0x112   : > { %v706_v31 = vadd.f32 1.0, %v1496_v26  ;;  %1513 = vpow2.f32 %v1362_v17  ;;  %v1363_v34 = vmul.f32 -1.442695, %v551_v29  ;;  %v357_v29 = vsub.f32 %v260_v25, %v1895_v49 }
 0x113   : > { %v1498_v36 = vpop.eup %1497  ;;  %v1903_v39 = vpop.f32.mrf.mxu0 }
 0x114   : > { %1515 = vrcp.f32 %v706_v31  ;;  %v707_v41 = vadd.f32 1.0, %v1498_v36 }
 0x115   : > { %v1500_v44 = vpop.eup %1499  ;;  %1517 = vpow2.f32 %v1363_v34  ;;  %v555_v46 = vpop.f32.mrf.mxu0 }
 0x116   : > { %1519 = vrcp.f32 %v707_v41  ;;  %v708_v55 = vadd.f32 1.0, %v1500_v44  ;;  %v1365_v56 = vmul.f32 -1.442695, %v555_v46  ;;  %v358_v41 = vsub.f32 %v261_v28, %v1897_v53 }
 0x117   : > { %v1502_v57 = vpop.eup %1501  ;;  %v1911_v58 = vpop.f32.mrf.mxu0 }
 0x118   : > { %1521 = vrcp.f32 %v708_v55  ;;  %v709_v61 = vadd.f32 1.0, %v1502_v57  ;;  %v359_v55 = vsub.f32 %v262_v30, %v1895_v49 }
 0x119   : > { %v1504_v62 = vpop.eup %1503  ;;  %1523 = vpow2.f32 %v1365_v56  ;;  %v1919_v63 = vpop.f32.mrf.mxu0 }
 0x11a   : > { %v1921_v1 = vpop.eup %1505  ;;  %1525 = vrcp.f32 %v709_v61  ;;  %v710_v2 = vadd.f32 1.0, %v1504_v62 }
 0x11b   : > { %v1508_v4 = vpop.eup %1507  ;;  %v1926_v5 = vpop.f32.mrf.mxu0  ;;  %v1942_v13 = vmul.f32 %v1921_v1, %v353_v3  ;;  %v1958_v31 = vmul.f32 %v1921_v1, %v355_v12  ;;  %v1980_v56 = vmul.f32 %v1921_v1, %v357_v29 }
 0x11c   : > { %v1931_v7 = vpop.eup %1509  ;;  %1527 = vrcp.f32 %v710_v2  ;;  %v711_v8 = vadd.f32 1.0, %v1508_v4  ;;  %v1997_v4 = vmul.f32 %v1921_v1, %v359_v55 }
 0x11d   : > { %v1512_v10 = vpop.eup %1511  ;;  %v1936_v11 = vpop.f32.mrf.mxu0  ;;  %v1950_v23 = vmul.f32 %v1931_v7, %v354_v9  ;;  %v1969_v44 = vmul.f32 %v1931_v7, %v356_v18  ;;  %v1989_v61 = vmul.f32 %v1931_v7, %v358_v41  ;;  %v361_v9 = vsub.f32 %v264_v35, %v1895_v49 }
 0x11e   : > { %1529 = vrcp.f32 %v711_v8  ;;  %v712_v20 = vadd.f32 1.0, %v1512_v10  ;;  %v2008_v10 = vmul.f32 %v1931_v7, %v360_v60 }
 0x11f   : > { %v1514_v14 = vpop.eup %1513  ;;  %v1944_v15 = vpop.f32.mrf.mxu0  ;;  %v2020_v29 = vmul.f32 %v1921_v1, %v361_v9 }
 0x120   : > { %1531 = vrcp.f32 %v712_v20  ;;  %v713_v16 = vadd.f32 1.0, %v1514_v14 }
 0x121   : > { %v1516_v17 = vpop.eup %1515  ;;  %v1952_v26 = vpop.f32.mrf.mxu0 }
 0x122   : > { %v1518_v21 = vpop.eup %1517  ;;  %1533 = vrcp.f32 %v713_v16  ;;  %v1961_v34 = vmul.f32 %v1516_v17, %v1942_v13 }
 0x123   : > { %v1520_v19 = vpop.eup %1519  ;;  %v714_v24 = vadd.f32 1.0, %v1518_v21  ;;  %v1963_v36 = vpop.f32.mrf.mxu0  ;;  %v363_v21 = vsub.f32 %v266_v40, %v1895_v49 }
 0x124   : > { %v1972_v46 = vmul.f32 %v1520_v19, %v1950_v23 }
 0x125   : > { %v1522_v25 = vpop.eup %1521  ;;  %1535 = vrcp.f32 %v714_v24  ;;  %v1974_v51 = vpop.f32.mrf.mxu0  ;;  %v2030_v55 = vmul.f32 %v1921_v1, %v363_v21 }
 0x126   : > { %v1524_v54 = vpop.eup %1523  ;;  %v1983_v22 = vmul.f32 %v1522_v25, %v1958_v31 }
 0x127   : > { %v1526_v28 = vpop.eup %1525  ;;  %v716_v57 = vadd.f32 1.0, %v1524_v54  ;;  %v577_v59 = vpop.f32.mrf.mxu0 }
 0x128   : > { %v1992_v62 = vmul.f32 %v1526_v28, %v1969_v44  ;;  %v1364_v28 = vmul.f32 -1.442695, %v1903_v39 }
 0x129   : > { %v1528_v2 = vpop.eup %1527  ;;  %1537 = vrcp.f32 %v716_v57  ;;  %v581_v3 = vpop.f32.mrf.mxu0  ;;  %v1366_v57 = vmul.f32 -1.442695, %v1911_v58 }
 0x12a   : > { %v2000_v6 = vmul.f32 %v1528_v2, %v1980_v56  ;;  %1539 = vpow2.f32 %v1364_v28  ;;  %v1375_v25 = vmul.f32 -1.442695, %v581_v3  ;;  %v1368_v3 = vmul.f32 -1.442695, %v1926_v5 }
 0x12b   : > { %v1530_v33 = vpop.eup %1529  ;;  %v583_v8 = vpop.f32.mrf.mxu0  ;;  %1541 = vpow2.f32 %v1366_v57 }
 0x12c   : > { %v2011_v20 = vmul.f32 %v1530_v33, %v1989_v61 }
 0x12d   : > { %v1532_v12 = vpop.eup %1531  ;;  %v585_v14 = vpop.f32.mrf.mxu0 }
 0x12e   : > { %v2014_v16 = vmul.f32 %v1532_v12, %v1997_v4  ;;  %v1377_v57 = vmul.f32 -1.442695, %v585_v14 }
 0x12f   : > { %v1534_v18 = vpop.eup %1533  ;;  %v587_v17 = vpop.f32.mrf.mxu0 }
 0x130   : > { %v2023_v35 = vmul.f32 %v1534_v18, %v2008_v10  ;;  %v1376_v18 = vmul.f32 -1.442695, %v583_v8  ;;  %v1378_v21 = vmul.f32 -1.442695, %v587_v17 }
 0x131   : > { %v591_v24 = vpop.f32.mrf.mxu0 }
 0x132   : > { %v1536_v41 = vpop.eup %1535 }
 0x133   : > { %v593_v54 = vpop.f32.mrf.mxu0  ;;  %v2033_v40 = vmul.f32 %v1536_v41, %v2020_v29 }
 0x134   : > { %v1380_v33 = vmul.f32 -1.442695, %v593_v54 }
 0x135   : > { %v595_v60 = vpop.f32.mrf.mxu0 }
 0x136   : > { %v1538_v2 = vpop.eup %1537  ;;  %1543 = vpow2.f32 %v1380_v33  ;;  %v1381_v27 = vmul.f32 -1.442695, %v595_v60  ;;  %v1367_v33 = vmul.f32 -1.442695, %v1919_v63 }
 0x137   : > { %v597_v9 = vpop.f32.mrf.mxu0  ;;  %v2038_v12 = vmul.f32 %v1538_v2, %v2030_v55  ;;  %v1379_v2 = vmul.f32 -1.442695, %v591_v24  ;;  %v2044_v60 = vpop.eup %1539  ;;  %v1370_v24 = vmul.f32 -1.442695, %v1944_v15 }
 0x138   : > { %v1382_v0 = vmul.f32 -1.442695, %v597_v9  ;;  %v1374_v9 = vmul.f32 -1.442695, %v577_v59  ;;  %v715_v42 = vadd.f32 1.0, %v2044_v60 }
 0x139   : > { %v601_v30 = vpop.f32.mrf.mxu0  ;;  %v1448_v41 = vpack.c.bf16 %v2038_v12, %v2033_v40  ;;  %v2154_v40 = vpack.c.bf16 %v1992_v62, %v1972_v46  ;;  %v1686_v62 = vmov 32  }
 0x13a   : > { %v1383_v39 = vmul.f32 -1.442695, %v601_v30  ;;  %1545 = vpow2.f32 %v1382_v0  ;;  %v1372_v0 = vmul.f32 -1.442695, %v1963_v36  ;;  %v1373_v30 = vmul.f32 -1.442695, %v1974_v51  ;;  %1489 = vset.pattern.permute.xlu1 %v1686_v62  ;;  %1490 = vset.pattern.permute.xlu0 %v1686_v62 }
 0x13b   : > { %v603_v58 = vpop.f32.mrf.mxu0  ;;  %1547 = vpow2.f32 %v1376_v18  ;;  %v1369_v36 = vmul.f32 -1.442695, %v1936_v11 }
 0x13c   : > { %v1384_v54 = vmul.f32 -1.442695, %v603_v58  ;;  %1549 = vpow2.f32 %v1378_v21 }
 0x13d   : > { %v605_v19 = vpop.f32.mrf.mxu0  ;;  %1551 = vpow2.f32 %v1383_v39 }
 0x13e   : > { %v1385_v28 = vmul.f32 -1.442695, %v605_v19  ;;  %1553 = vpow2.f32 %v1384_v54  ;;  %v2047_v19 = vpop.eup %1541 }
 0x13f   : > { %v607_v8 = vpop.f32.mrf.mxu0  ;;  %1555 = vpow2.f32 %v1381_v27  ;;  %v1371_v27 = vmul.f32 -1.442695, %v1952_v26 }
 0x140   : > { %v1386_v17 = vmul.f32 -1.442695, %v607_v8  ;;  %1557 = vpow2.f32 %v1385_v28 }
 0x141   : > { %1559 = vpow2.f32 %v1379_v2 }
 0x142   : > { %1561 = vpow2.f32 %v1386_v17 }
 0x143   : > { %1563 = vpow2.f32 %v1377_v57  ;;  %v1544_v59 = vpop.eup %1543 }
 0x144   : > { %1565 = vpow2.f32 %v1374_v9  ;;  %v731_v15 = vadd.f32 1.0, %v1544_v59 }
 0x145   : > { %1567 = vpow2.f32 %v1375_v25 }
 0x146   : > { %1569 = vpow2.f32 %v1372_v0 }
 0x147   : > { %v1546_v14 = vpop.eup %1545  ;;  %1571 = vpow2.f32 %v1373_v30 }
 0x148   : > { %v1548_v51 = vpop.eup %1547  ;;  %1573 = vpow2.f32 %v1370_v24  ;;  %v733_v39 = vadd.f32 1.0, %v1546_v14 }
 0x149   : > { %v1550_v18 = vpop.eup %1549  ;;  %1575 = vpow2.f32 %v1371_v27  ;;  %v727_v24 = vadd.f32 1.0, %v1548_v51 }
 0x14a   : > { %v1552_v21 = vpop.eup %1551  ;;  %1577 = vpow2.f32 %v1368_v3  ;;  %v729_v57 = vadd.f32 1.0, %v1550_v18 }
 0x14b   : > { %v1554_v26 = vpop.eup %1553  ;;  %1579 = vpow2.f32 %v1369_v36  ;;  %v734_v54 = vadd.f32 1.0, %v1552_v21 }
 0x14c   : > { %v1556_v25 = vpop.eup %1555  ;;  %1581 = vpow2.f32 %v1367_v33  ;;  %v735_v5 = vadd.f32 1.0, %v1554_v26 }
 0x14d   : > { %v1558_v58 = vpop.eup %1557  ;;  %1583 = vrcp.f32 %v731_v15  ;;  %v732_v63 = vadd.f32 1.0, %v1556_v25 }
 0x14e   : > { %v1560_v11 = vpop.eup %1559  ;;  %1585 = vrcp.f32 %v733_v39  ;;  %v736_v2 = vadd.f32 1.0, %v1558_v58  ;;  %v367_v58 = vsub.f32 %v270_v50, %v1895_v49  ;;  %v365_v50 = vsub.f32 %v268_v45, %v1895_v49 }
 0x14f   : > { %v1562_v28 = vpop.eup %1561  ;;  %1587 = vrcp.f32 %v735_v5  ;;  %v730_v0 = vadd.f32 1.0, %v1560_v11 }
 0x150   : > { %v1564_v8 = vpop.eup %1563  ;;  %1589 = vrcp.f32 %v736_v2  ;;  %v737_v17 = vadd.f32 1.0, %v1562_v28  ;;  %v366_v28 = vsub.f32 %v269_v48, %v1897_v53  ;;  %v2073_v47 = vmul.f32 %v1921_v1, %v367_v58 }
 0x151   : > { %v1566_v9 = vpop.eup %1565  ;;  %1591 = vrcp.f32 %v734_v54  ;;  %v728_v59 = vadd.f32 1.0, %v1564_v8  ;;  %v364_v54 = vsub.f32 %v267_v43, %v1897_v53  ;;  %v385_v49 = vmul.f32 %v1921_v1, %v365_v50 }
 0x152   : > { %v1568_v30 = vpop.eup %1567  ;;  %1593 = vrcp.f32 %v737_v17  ;;  %v725_v14 = vadd.f32 1.0, %v1566_v9  ;;  %v717_v17 = vadd.f32 1.0, %v2047_v19  ;;  %v386_v32 = vmul.f32 %v1931_v7, %v366_v28 }
 0x153   : > { %v1570_v27 = vpop.eup %1569  ;;  %1595 = vrcp.f32 %v732_v63  ;;  %v726_v33 = vadd.f32 1.0, %v1568_v30  ;;  %v368_v63 = vsub.f32 %v271_v52, %v1897_v53  ;;  %v2076_v52 = vmul.f32 %v1931_v7, %v364_v54 }
 0x154   : > { %v1572_v3 = vpop.eup %1571  ;;  %1597 = vrcp.f32 %v729_v57  ;;  %v723_v21 = vadd.f32 1.0, %v1570_v27  ;;  %v382_v19 = vmul.f32 %v1931_v7, %v362_v37 }
 0x155   : > { %v1574_v36 = vpop.eup %1573  ;;  %1599 = vrcp.f32 %v730_v0  ;;  %v724_v39 = vadd.f32 1.0, %v1572_v3  ;;  %v388_v38 = vmul.f32 %v1931_v7, %v368_v63 }
 0x156   : > { %v1576_v15 = vpop.eup %1575  ;;  %1601 = vrcp.f32 %v727_v24  ;;  %v721_v25 = vadd.f32 1.0, %v1574_v36 }
 0x157   : > { %v1578_v18 = vpop.eup %1577  ;;  %1603 = vrcp.f32 %v728_v59  ;;  %v722_v5 = vadd.f32 1.0, %v1576_v15 }
 0x158   : > { %v1580_v26 = vpop.eup %1579  ;;  %1605 = vrcp.f32 %v725_v14  ;;  %v719_v2 = vadd.f32 1.0, %v1578_v18 }
 0x159   : > { %v1582_v51 = vpop.eup %1581  ;;  %1607 = vrcp.f32 %v726_v33  ;;  %v720_v57 = vadd.f32 1.0, %v1580_v26 }
 0x15a   : > { %v1584_v11 = vpop.eup %1583  ;;  %1609 = vrcp.f32 %v723_v21  ;;  %v718_v9 = vadd.f32 1.0, %v1582_v51 }
 0x15b   : > { %v1586_v8 = vpop.eup %1585  ;;  %1611 = vrcp.f32 %v724_v39  ;;  %v883_v33 = vmul.f32 %v1584_v11, %v382_v19 }
 0x15c   : > { %v1588_v43 = vpop.eup %1587  ;;  %1613 = vrcp.f32 %v721_v25  ;;  %v885_v59 = vmul.f32 %v1586_v8, %v2076_v52 }
 0x15d   : > { %v1590_v48 = vpop.eup %1589  ;;  %1615 = vrcp.f32 %v722_v5  ;;  %v887_v24 = vmul.f32 %v1588_v43, %v386_v32 }
 0x15e   : > { %v1592_v0 = vpop.eup %1591  ;;  %1617 = vrcp.f32 %v719_v2  ;;  %v888_v53 = vmul.f32 %v1590_v48, %v2073_v47  ;;  %v1457_v7 = vpack.c.bf16 %v885_v59, %v883_v33  ;;  %v988_v59 = vpop.permute.xlu0 %987 }
 0x15f   : > { %v1594_v45 = vpop.eup %1593  ;;  %1619 = vrcp.f32 %v720_v57  ;;  %v886_v3 = vmul.f32 %v1592_v0, %v385_v49 }
 0x160   : > { %v1596_v30 = vpop.eup %1595  ;;  %1621 = vrcp.f32 %v717_v17  ;;  %v889_v27 = vmul.f32 %v1594_v45, %v388_v38 }
 0x161   : > { %v1598_v60 = vpop.eup %1597  ;;  %1623 = vrcp.f32 %v718_v9  ;;  %v1458_v21 = vpack.c.bf16 %v888_v53, %v886_v3  ;;  %v884_v1 = vmul.f32 %v1596_v30, %v2030_v55 }
 0x162   : > { %v1600_v14 = vpop.eup %1599  ;;  %1625 = vrcp.f32 %v715_v42  ;;  %v1459_v36 = vpack.c.bf16 %v889_v27, %v887_v24  ;;  %v881_v39 = vmul.f32 %v1598_v60, %v2008_v10  ;;  %v978_v27 = vpop.permute.xlu1 %977 }
 0x163   : > { %v1602_v15 = vpop.eup %1601  ;;  %v882_v25 = vmul.f32 %v1600_v14, %v2020_v29  ;;  %v993_v33 = vpop.permute.xlu0 %992 }
 0x164   : > { %v1604_v18 = vpop.eup %1603  ;;  %1080 = vmatprep.subr.bf16.mxu1 %v1459_v36  ;;  %v879_v5 = vmul.f32 %v1602_v15, %v1989_v61 }
 0x165   : > { %v1606_v26 = vpop.eup %1605  ;;  %1081 = vmatpush1.bf16.msra.mxu1 %v1458_v21  ;;  %v1456_v54 = vpack.c.bf16 %v884_v1, %v882_v25  ;;  %v880_v11 = vmul.f32 %v1604_v18, %v1997_v4 }
 0x166   : > { %v1608_v51 = vpop.eup %1607  ;;  %1082 = vmatprep.subr.bf16.mxu1 %v1457_v7  ;;  %v1455_v28 = vpack.c.bf16 %v881_v39, %v879_v5  ;;  %v877_v55 = vmul.f32 %v1606_v26, %v1969_v44 }
 0x167   : > { %v1610_v58 = vpop.eup %1609  ;;  %v878_v10 = vmul.f32 %v1608_v51, %v1980_v56 }
 0x168   : > { %v1612_v2 = vpop.eup %1611  ;;  %v875_v29 = vmul.f32 %v1610_v58, %v1950_v23 }
 0x169   : > { %v1614_v63 = vpop.eup %1613  ;;  %1083 = vmatpush1.bf16.msra.mxu1 %v1456_v54  ;;  %v1454_v50 = vpack.c.bf16 %v880_v11, %v878_v10  ;;  %v876_v61 = vmul.f32 %v1612_v2, %v1958_v31 }
 0x16a   : > { %v1616_v8 = vpop.eup %1615  ;;  %1084 = vmatprep.subr.bf16.mxu1 %v1455_v28  ;;  %v1453_v43 = vpack.c.bf16 %v877_v55, %v875_v29  ;;  %v817_v17 = vmul.f32 %v1614_v63, %v388_v38 }
 0x16b   : > { %v1618_v57 = vpop.eup %1617  ;;  %v874_v48 = vmul.f32 %v1616_v8, %v1942_v13  ;;  %v2152_v13 = vpack.c.bf16 %v2023_v35, %v2011_v20  ;;  %v2155_v20 = vpack.c.bf16 %v1983_v22, %v1961_v34  ;;  %v949_v35 = vld [vmem:[%s2148_s2 + $0x98] sm:$0xff]  ;;  %v950_v34 = vld [vmem:[%s2148_s2 + $0xa0] sm:$0xff]  ;;  %v1153_v22 = vld [vmem:[%s2148_s2 + $0xd0] sm:$0x3] }
 0x16c   : > { %v1620_v37 = vpop.eup %1619  ;;  %v815_v9 = vmul.f32 %v1618_v57, %v386_v32  ;;  %v947_v32 = vld [vmem:[%s2148_s2 + $0x88] sm:$0xff]  ;;  %v953_v46 = vpack.c.bf16 %v950_v34, %v950_v34  ;;  %1157 = vperm.xlu1 %1489, %v1153_v22  }
 0x16d   : > { %v1622_v4 = vpop.eup %1621  ;;  %1085 = vmatpush1.bf16.msra.mxu1 %v1454_v50  ;;  %v1452_v56 = vpack.c.bf16 %v876_v61, %v874_v48  ;;  %v816_v42 = vmul.f32 %v1620_v37, %v2073_v47  ;;  %v2153_v47 = vpack.c.bf16 %v2014_v16, %v2000_v6  ;;  %v2156_v6 = vmov 0   ;;  %v948_v16 = vld [vmem:[%s2148_s2 + $0x90] sm:$0xff] }
 0x16e   : > { %v1624_v44 = vpop.eup %1623  ;;  %1086 = vmatprep.subr.bf16.mxu1 %v1453_v43  ;;  %v1451_v45 = vpack.c.bf16 %v817_v17, %v815_v9  ;;  %v813_v23 = vmul.f32 %v1622_v4, %v2076_v52  ;;  %v946_v52 = vld [vmem:[%s2148_s2 + $0x80] sm:$0xff]  ;;  %v1154_v4 = vpack.c.bf16 %v1153_v22, %v1153_v22 }
 0x16f   : > { %v1626_v0 = vpop.eup %1625  ;;  %v814_v53 = vmul.f32 %v1624_v44, %v385_v49  ;;  %v951_v12 = vpack.c.bf16 %v947_v32, %v946_v52  ;;  %v998_v44 = vpop.permute.xlu0 %997 }
 0x170   : > { %v811_v31 = vmul.f32 %v1626_v0, %v382_v19 }
 0x171   : > { %1087 = vmatpush1.bf16.msra.mxu1 %v1452_v56  ;;  %v1450_v30 = vpack.c.bf16 %v816_v42, %v814_v53 }
 0x172   : > { %1088 = vmatprep.subr.bf16.mxu1 %v1451_v45  ;;  %v1449_v38 = vpack.c.bf16 %v813_v23, %v811_v31 }
 0x175   : > { %1089 = vmatpush1.bf16.msra.mxu1 %v1450_v30 }
 0x176   : > { %1090 = vmatprep.subr.bf16.mxu1 %v1449_v38 }
 0x179   : > { %1091 = vmatpush1.bf16.msra.mxu1 %v1448_v41  ;;  %v952_v41 = vpack.c.bf16 %v949_v35, %v948_v16 }
 0x17a   : > { %1092 = vmatprep.subr.bf16.mxu1 %v2152_v13 }
 0x17d   : > { %1093 = vmatpush1.bf16.msra.mxu1 %v2153_v47 }
 0x17e   : > { %1094 = vmatprep.subr.bf16.mxu1 %v2154_v40  ;;  %v983_v36 = vpop.permute.xlu1 %982 }
 0x181   : > { %1095 = vmatpush1.bf16.msra.mxu1 %v2155_v20 }
 0x184   : > { %1113 = vmatmul.mubr.bf16.vlgmr.msra.gmra.mxu1 %v951_v12 }
 0x185   : > { %1122 = vmatprep.mubr.bf16.mxu1 %v2156_v6 }
 0x18c   : > { %1123 = vmatmul.mubr.bf16.gmra.mxu1 %v952_v41 }
 0x18d   : > { %1132 = vmatprep.mubr.bf16.mxu1 %v2156_v6 }
 0x194   : > { %1133 = vmatmul.mubr.bf16.gmra.mxu1 %v953_v46 }
 0x195   : > { %1196 = vmatprep.mubr.bf16.mxu1 %v2156_v6 }
 0x1e7   : > { %v1158_v48 = vpop.permute.xlu1 %1157 }
 0x244   : > { %v1114_v49 = vpop.f32.mrf.mxu1 }
 0x245   : > { %v1115_v28 = vadd.f32 %v1114_v49, %v978_v27 }
 0x246   : > { %v1116_v19 = vpop.f32.mrf.mxu1 }
 0x247   : > { %v1117_v26 = vadd.f32 %v1116_v19, %v978_v27  ;;  %v1141_v37 = vmax.f32 %v1115_v28, 0.0 }
 0x248   : > { %v1118_v24 = vpop.f32.mrf.mxu1 }
 0x249   : > { %v1119_v51 = vadd.f32 %v1118_v24, %v983_v36  ;;  %v1142_v10 = vmax.f32 %v1117_v26, 0.0 }
 0x24a   : > { %v1120_v60 = vpop.f32.mrf.mxu1 }
 0x24b   : > { %v1121_v21 = vadd.f32 %v1120_v60, %v983_v36  ;;  %v1143_v29 = vmax.f32 %v1119_v51, 0.0 }
 0x24c   : > { %v1124_v3 = vpop.f32.mrf.mxu1 }
 0x24d   : > { %v1125_v7 = vadd.f32 %v1124_v3, %v988_v59  ;;  %v1144_v54 = vmax.f32 %v1121_v21, 0.0  ;;  %v1149_v17 = vpack.c.bf16 %v1143_v29, %v1141_v37 }
 0x24e   : > { %v1126_v14 = vpop.f32.mrf.mxu1 }
 0x24f   : > { %v1127_v1 = vadd.f32 %v1126_v14, %v988_v59  ;;  %v1145_v55 = vmax.f32 %v1125_v7, 0.0  ;;  %v1150_v61 = vpack.c.bf16 %v1144_v54, %v1142_v10 }
 0x250   : > { %v1128_v15 = vpop.f32.mrf.mxu1 }
 0x251   : > { %v1129_v18 = vadd.f32 %v1128_v15, %v993_v33  ;;  %v1146_v11 = vmax.f32 %v1127_v1, 0.0 }
 0x252   : > { %v1130_v39 = vpop.f32.mrf.mxu1 }
 0x253   : > { %v1131_v25 = vadd.f32 %v1130_v39, %v993_v33  ;;  %v1147_v5 = vmax.f32 %v1129_v18, 0.0 }
 0x254   : > { %v1134_v58 = vpop.f32.mrf.mxu1 }
 0x255   : > { %v1148_v2 = vmax.f32 %v1131_v25, 0.0  ;;  %v1151_v57 = vpack.c.bf16 %v1147_v5, %v1145_v55  ;;  %v1135_v0 = vadd.f32 %v1134_v58, %v998_v44 }
 0x256   : > { %v1136_v63 = vpop.f32.mrf.mxu1 }
 0x257   : > { %v1152_v8 = vpack.c.bf16 %v1148_v2, %v1146_v11  ;;  %v1137_v45 = vadd.f32 %v1136_v63, %v998_v44 }
 0x258   : > { %v1138_v50 = vpop.f32.mrf.mxu1 }
 0x259   : > { %1176 = vmatprep.subr.bf16.mxu1 %v1152_v8 }
 0x25a   : > { %1177 = vmatpush1.bf16.msra.mxu1 %v1151_v57  ;;  %v1139_v43 = vpop.f32.mrf.mxu1 }
 0x25b   : > { %1178 = vmatprep.subr.bf16.mxu1 %v1150_v61 }
 0x25e   : > { %1179 = vmatpush1.bf16.msra.mxu1 %v1149_v17 }
 0x261   : > { %1419 = vmatmul.mubr.msk.bf16.vlgmr.msra.gmra.mxu1 %vm1160_vm3, %v1154_v4 }
 0x321   : > { %v1198_v9 = vpop.f32.mrf.mxu1 }
 0x322   : > { %v1199_v56 = vadd.f32 %v1198_v9, %v1158_v48 }
 0x323   : > { %v1200_v42 = vpop.f32.mrf.mxu1 }
 0x324   : > { %v1205_v23 = vadd.f32 %v1199_v56, %v1135_v0  ;;  %v1201_v53 = vadd.f32 %v1200_v42, %v1158_v48 }
 0x325   : > { %v1202_v31 = vpop.f32.mrf.mxu1 }
 0x326   : > { %v1420_v30 = vmul.f32 -1.442695, %v1205_v23  ;;  %v1206_v38 = vadd.f32 %v1201_v53, %v1137_v45 }
 0x327   : > { %v1203_v13 = vpop.f32.mrf.mxu1 }
 0x328   : > { %1627 = vpow2.f32 %v1420_v30  ;;  %v1421_v47 = vmul.f32 -1.442695, %v1206_v38 }
 0x32a   : > { %1629 = vpow2.f32 %v1421_v47 }
 0x335   : > { %v1628_v52 = vpop.eup %1627 }
 0x336   : > { %v1213_v32 = vadd.f32 1.0, %v1628_v52 }
 0x337   : > { %v1630_v40 = vpop.eup %1629 }
 0x338   : > { %v1214_v12 = vadd.f32 1.0, %v1630_v40  ;;  %1631 = vrcp.f32 %v1213_v32 }
 0x33a   : > { %1633 = vrcp.f32 %v1214_v12 }
 0x345   : > { %v1632_v20 = vpop.eup %1631 }
 0x347   : > { %v1634_v6 = vpop.eup %1633 }
 0x348   : > { %v1221_v16 = vcombine.low %v1632_v20, %v1634_v6 }
 0x34a   : > { %1422 = vst.sshfl [vmem:[%s244_s8] sm:$0x33 pattern:$0x76325410] %v1221_v16 }
 0x34b PF: > { %s13_s14 = sadd.s32 1, %s1681_s14   ;;  %s2157_s12 = smov %s1677_s13 }
 0x34c   : > { %p10_p5 = scmp.ge.s32.totalorder %s13_s14, 4   ;;  %s2158_s13 = smov %s2160_s15 }
 0x34e   :  { %12 = sbr.rel (!%p10_p5) target bundleno = 2 (0x2), region = 65 }

</bundles_post_ra>
